<compile_context>
chip_gen: v7x
topology: tpu7x:2x2x1
jax: 0.10.0
libtpu: 0.0.40
codegen_flags: <defaults>
</compile_context>

<pallas_src>
import jax
import jax.numpy as jnp
from jax.experimental import pallas as pl
from jax.experimental.pallas import tpu as pltpu


def _make_slice_kernel(start, s_out):
    def kernel(x_ref, o_ref):
        # x_ref block: (1, S, tc); o_ref block: (1, S_out, tc)
        o_ref[...] = x_ref[:, start:start + s_out, :]
    return kernel


def _pick_channel_tile(C, S, S_out, itemsize):
    """Lane-dense channel tile bounded so double-buffered in+out blocks fit
    comfortably under the smallest (v5e) default scoped-VMEM limit."""
    if C <= 128:
        return C
    budget = 8 * 1024 * 1024                       # bytes for 2x(in+out) blocks
    per_lane = 2 * (S + S_out) * itemsize          # buffered bytes per channel
    tc = max(128, min(budget // max(per_lane, 1), 1024) // 128 * 128)
    tc = min(tc, ((C + 127) // 128) * 128)         # never wider than (padded) C
    return int(tc)


def slice_pallas(x, start_index=1):
    """Equivalent of `x[:, start_index:]` as a Pallas TPU kernel."""
    nd = x.ndim
    assert nd >= 2, "Slice expects at least 2-D input"

    S = x.shape[1]
    if start_index < 0:
        start = max(S + start_index, 0)
    else:
        start = min(start_index, S)
    S_out = S - start
    out_shape_full = (x.shape[0], S_out) + tuple(x.shape[2:])

    if S_out == 0:
        return jnp.zeros(out_shape_full, x.dtype)

    itemsize = jnp.dtype(x.dtype).itemsize

    if nd == 2:
        # Rare path: slicing the lane axis directly. Shapes here are small in
        # this module's usage, so a single whole-array block is fine.
        B2, _ = x.shape

        def k2(x_ref, o_ref):
            o_ref[...] = x_ref[:, start:start + S_out]

        return pl.pallas_call(
            k2,
            out_shape=jax.ShapeDtypeStruct((B2, S_out), x.dtype),
            cost_estimate=pl.CostEstimate(
                flops=0, transcendentals=0,
                bytes_accessed=(x.size + B2 * S_out) * itemsize),
        )(x)

    # nd >= 3: collapse trailing dims into one channel axis (free reshape for
    # a row-major array), run the tiled copy, reshape back.
    B = x.shape[0]
    C = 1
    for d in x.shape[2:]:
        C *= d
    x3 = x.reshape(B, S, C)

    tc = _pick_channel_tile(C, S, S_out, itemsize)
    grid = (B, pl.cdiv(C, tc))

    out3 = pl.pallas_call(
        _make_slice_kernel(start, S_out),
        out_shape=jax.ShapeDtypeStruct((B, S_out, C), x.dtype),
        grid=grid,
        in_specs=[pl.BlockSpec((1, S, tc), lambda b, j: (b, 0, j))],
        out_specs=pl.BlockSpec((1, S_out, tc), lambda b, j: (b, 0, j)),
        compiler_params=pltpu.CompilerParams(
            dimension_semantics=("parallel", "parallel")),
        cost_estimate=pl.CostEstimate(
            flops=0, transcendentals=0,
            bytes_accessed=(B * S * C + B * S_out * C) * itemsize),
    )(x3)
    return out3.reshape(out_shape_full)


if __name__ == "__main__":
    key = jax.random.PRNGKey(0)
    k0, k1, k2 = jax.random.split(key, 3)

    # ViT-style token tensor (B, S, C); Slice(start_index=1) drops the CLS token.
    B, S, C = 2, 8, 32
    x = jax.random.normal(k0, (B, S, C), dtype=jnp.float32)

    out = jax.block_until_ready(slice_pallas(x, 1))
    ref = x[:, 1:]
    assert out.shape == ref.shape, (out.shape, ref.shape)
    assert out.dtype == ref.dtype
    assert bool(jnp.all(out == ref))

    # Wider channel dim exercises the lane-dense (multiple-of-128) tile path.
    xw = jax.random.normal(k1, (2, 8, 256), dtype=jnp.float32)
    outw = jax.block_until_ready(slice_pallas(xw, 1))
    assert bool(jnp.all(outw == xw[:, 1:]))

    # Higher-rank input exercises the trailing-dim collapse path.
    x4 = jax.random.normal(k2, (2, 5, 4, 8), dtype=jnp.float32)
    out4 = jax.block_until_ready(slice_pallas(x4, 1))
    assert out4.shape == (2, 4, 4, 8)
    assert bool(jnp.all(out4 == x4[:, 1:]))

    print("KERNEL_OK")
</pallas_src>

<mosaic_0001>
module attributes {stable_mosaic.version = 11 : i64} {
  func.func @kernel(%arg0: i32, %arg1: i32, %arg2: memref<1x8x32xf32, #tpu.memory_space<vmem>>, %arg3: memref<1x7x32xf32, #tpu.memory_space<vmem>>) attributes {dimension_semantics = [#tpu.dimension_semantics<parallel>, #tpu.dimension_semantics<parallel>], iteration_bounds = array<i64: 2, 1>, scalar_prefetch = 0 : i64, scratch_operands = 0 : i64, tpu.core_type = #tpu.core_type<tc>, window_params = [{transform_indices = @transform_0, window_bounds = array<i64: 1, 8, 32>}, {transform_indices = @transform_1, window_bounds = array<i64: 1, 7, 32>}]} {
    %c0 = arith.constant 0 : index
    %c1 = arith.constant 1 : index
    %c0_0 = arith.constant 0 : index
    %0 = vector.load %arg2[%c0, %c1, %c0_0] : memref<1x8x32xf32, #tpu.memory_space<vmem>>, vector<1x7x32xf32>
    %c0_1 = arith.constant 0 : index
    %c0_2 = arith.constant 0 : index
    %c0_3 = arith.constant 0 : index
    %1 = vector.load %arg3[%c0_1, %c0_2, %c0_3] : memref<1x7x32xf32, #tpu.memory_space<vmem>>, vector<1x7x32xf32>
    tpu.vector_store %arg3[%c0_1, %c0_2, %c0_3], %0 {strides = array<i32>} : memref<1x7x32xf32, #tpu.memory_space<vmem>>, vector<1x7x32xf32>,
    return
  }
  func.func @transform_0(%arg0: i32, %arg1: i32) -> (i32, i32, i32) {
    %c0_i32 = arith.constant 0 : i32
    %c0_i32_0 = arith.constant 0 : i32
    return %arg0, %c0_i32, %arg1 : i32, i32, i32
  }
  func.func @transform_1(%arg0: i32, %arg1: i32) -> (i32, i32, i32) {
    %c0_i32 = arith.constant 0 : i32
    %c0_i32_0 = arith.constant 0 : i32
    return %arg0, %c0_i32, %arg1 : i32, i32, i32
  }
}

</mosaic_0001>

<bundles_post_ra>
// kernel: tpu_custom_call.1
= control target key start
LH: loop header
LB: loop body
LE: loop exit
PB: predicated region body
PF: predicated region fallthrough
CT: control target
= control target key end

     0   :  { %6 = vsyncpa [#allocation3], 0  ;;  %s526_s0 = inlined_call_operand.hbm [shape: f32[2,8,32], index: 0, kind: input, shape index: {}]   ;;  %s527_s1 = inlined_call_operand.vmem [shape: f32[2,7,32], index: 1, kind: output, shape index: {}]  }
   0x1   :  { %8 = vsyncpa [#allocation3 + $0x1], 0  ;;  %s401_s6 = smov 0   ;;  %s403_s7 = smov 0  }
   0x2   :  { %s405_s8 = smov 0   ;;  %s407_s9 = smov 0  }
   0x3   :  { %s409_s10 = smov 0   ;;  %s411_s11 = smov 0  }
   0x4 LB: > { %s242_s12 = sadd.s32 4294967295, %s388_s11   ;;  %s26_s13 = sadd.s32 1, %s384_s10  ;;  %s388_s11 = sphi %s411_s11, %s14_s11   ;;  %s384_s10 = sphi %s409_s10, %s537_s10   ;;  %s380_s9 = sphi %s407_s9, %s536_s9   ;;  %s376_s8 = sphi %s405_s8, %s535_s8   ;;  %s372_s7 = sphi %s403_s7, %s534_s7   ;;  %s368_s6 = sphi %s401_s6, %s533_s6  }
   0x5   : > { %p28_p0 = scmp.ge.s32.totalorder %s26_s13, 2  ;;  %s35_s14 = sadd.s32 1, %s376_s8 }
   0x6   : > { %p42_p1 = scmp.ne.s32.totalorder %s376_s8, %s372_s7  ;;  %p43_p2 = scmp.eq.s32.totalorder %s388_s11, 0 }
   0x7   : > { %s539_s13 = smov (%p28_p0, %s26_s13), 0  ;;  %p48_p4 = scmp.ne.s32.totalorder %s372_s7, %s368_s6 }
   0x8   : > { %p437_p3 = por %p43_p2, %p42_p1  ;;  %s30_s16 = ssub.s32 %s384_s10, %s539_s13 }
   0x9   : > { %p49_p5 = scmp.eq.s32.totalorder %s242_s12, 0  ;;  %p33_p6 = scmp.eq.s32.totalorder %s30_s16, 0 }
   0xa   : > { %p259_p8 = scmp.lt.s32.totalorder %s388_s11, 2  ;;  %s100_s19 = sand.u32 1, %s376_s8  }
   0xb   : > { %p444_p7 = por %p49_p5, %p48_p4  ;;  %s247_s20 = sshll.u32 %s384_s10, 7 }
   0xc   : > { %s450_s18 = scalar_select %p33_p6, %s376_s8, %s35_s14  }
   0xd   : > { %s246_s21 = sshll.u32 %s100_s19, 3  ;;  %s457_s24 = scalar_lea.hbm %s526_s0, %s247_s20 }
   0xe   : > { %s104_s25 = scalar_lea.vmem [#allocation2], %s246_s21  ;;  %p461_p9 = pnand %p259_p8, %p437_p3 }
   0xf   : > { %s112_s26 = sshll.u32 %s104_s25, 4  ;;  %s101_s28 = scalar_lea.sflag [#allocation3], %s100_s19  ;;  %s465_s26 = int_to_ptr.vmem [resolvable:$true] %s112_s26 }
  0x10   : > { %s308_s29 = scalar_lea.hbm %s457_s24, 128  ;;  %p310_p13 = pneg %p461_p9 }
  0x11   : > { %p309_p12 = scmp.ne.s32.totalorder %s457_s24, %s308_s29  ;;  %s313_s3 = scalar_lea.hbm %s526_s0, 256 }
  0x12   : > { %p314_p2 = scmp.lt.u32.totalorder %s457_s24, %s526_s0  ;;  %p315_p3 = scmp.lt.u32.totalorder %s313_s3, %s308_s29 }
  0x13   : > { %p311_p0 = pnand %p310_p13, %p309_p12  ;;  %p317_p5 = scmp.lt.u32.totalorder %s308_s29, %s457_s24 }
  0x14   : > { %p316_p4 = por %p315_p3, %p314_p2 }
  0x15   : > { %p312_p1 = pneg %p311_p0 }
  0x16   : > { %p318_p6 = por %p317_p5, %p316_p4 }
  0x18   : > { %p319_p8 = pnand %p318_p6, %p312_p1 }
  0x1a   : > { %322 = shalt.err (!%p319_p8)
}
  0x1b   : > { %s323_s6 = scalar_lea.vmem %s465_s26, 128  ;;  %s390_s12 = smov [#allocation2]  }
  0x1c   : > { %p324_p12 = scmp.ne.s32.totalorder %s465_s26, %s323_s6  ;;  %s328_s14 = sshll.u32 %s390_s12, 4  ;;  %s329_s14 = int_to_ptr.vmem [resolvable:$false] %s328_s14 }
  0x1d   : > { %s330_s15 = scalar_lea.vmem %s329_s14, 256  ;;  %p331_p11 = scmp.lt.s32.totalorder %s465_s26, %s329_s14 }
  0x1e   : > { %p326_p0 = pnand %p324_p12, %p310_p13  ;;  %p332_p2 = scmp.lt.s32.totalorder %s330_s15, %s323_s6 }
  0x20   : > { %p327_p10 = pneg %p326_p0  ;;  %p333_p3 = por %p332_p2, %p331_p11 }
  0x22   : > { %p334_p4 = pnand %p333_p3, %p327_p10 }
  0x24   : > { %337 = shalt.err (!%p334_p4)
}
  0x25   : > { %258 = dma.hbm_to_vmem [thread:$0]  (!%p461_p9), %s457_s24, 128, %s465_s26, %s101_s28  }
  0x26   : > { %p531_p1 = scmp.lt.s32.totalorder %s388_s11, 3  ;;  %p532_p5 = scmp.ge.s32.totalorder %s388_s11, 1 }
  0x28   : > { %p118_p13 = pnand %p532_p5, %p531_p1 }
  0x29   : > { %s123_s16 = sand.u32 (!%p118_p13), 1, %s372_s7  }
  0x2a   : > { %121 = sbr.rel (%p118_p13) target bundleno = 56 (0x38), region = 24  ;;  %s249_s19 = sshll.u32 (!%p118_p13), %s123_s16, 3 }
  0x2b   : > { %s124_s20 = scalar_lea.sflag (!%p118_p13), [#allocation3], %s123_s16  ;;  %s127_s21 = scalar_lea.vmem (!%p118_p13), [#allocation2], %s249_s19 }
  0x31   : > { %363 = dma.done.wait (%p444_p7), %s124_s20, 128  }
  0x32   : > { %365 = vsyncadd (%p444_p7), %s124_s20, 4294967168  ;;  %p148_p10 = scmp.lt.s32.totalorder %s380_s9, 1  ;;  %vm156_vm0 = vcmask 260096   ;;  %v155_v0 = vld [vmem:[%s127_s21 + $0x1] sm:$0x7f] }
  0x34   : > { %s541_s9 = smov (!%p148_p10, %s380_s9), 1 }
  0x35   : > { %s250_s22 = sshll.u32 %s541_s9, 3 }
  0x36   : > { %s154_s25 = scalar_lea.vmem %s527_s1, %s250_s22 }
  0x37   : > { %157 = vst.msk [vmem:[%s154_s25] sm:$0x7f] %vm156_vm0, %v155_v0 }
  0x38 PF: > { %s14_s11 = sadd.s32 1, %s388_s11   ;;  %s533_s6 = smov %s372_s7 }
  0x39   : > { %p11_p9 = scmp.ge.s32.totalorder %s14_s11, 4   ;;  %s534_s7 = smov %s376_s8 }
  0x3a   : > { %s535_s8 = smov %s450_s18  ;;  %s536_s9 = smov %s384_s10 }
  0x3b   : > { %s537_s10 = smov %s539_s13  ;;  %13 = sbr.rel (!%p11_p9) target bundleno = 4 (0x4), region = 64 }
  0x42   :  { %183 = vsyncpa [#allocation3], 1 }
  0x43   :  { %185 = vsyncpa [#allocation3 + $0x1], 1 }

</bundles_post_ra>
